<compile_context>
chip_gen: v5e
topology: v5e:2x2
jax: 0.10.0
libtpu: 0.0.40
codegen_flags: <defaults>
</compile_context>

<pallas_src>
import functools

import jax
import jax.numpy as jnp
from jax.experimental import pallas as pl
from jax.experimental.pallas import tpu as pltpu


def _win(idx, out_size, in_size):
    """PyTorch AdaptiveMaxPool2d window boundaries (static Python ints)."""
    start = (idx * in_size) // out_size
    end = -((-(idx + 1) * in_size) // out_size)  # ceil((idx + 1) * in / out)
    return start, end


def _vmem_capacity_bytes():
    """Physical VMEM per TensorCore; conservative 64 MiB (v7x) fallback."""
    cap = 64 * 1024 * 1024
    try:
        info = pltpu.get_tpu_info()
        cap = int(getattr(info, "vmem_capacity_bytes", cap))
    except Exception:
        pass
    return cap


def _choose_tiling(B, C, HW, itemsize, block_budget):
    """Pick (batch_fold, channel_tile) for grid = (B // bt, C // tc)."""
    # Channel tile: largest of {512, 256, 128} dividing C (512 cap bounds vreg
    # pressure in the band-maximum chain); otherwise use full C (small/odd C).
    tc = C
    for t in (512, 256, 128):
        if C % t == 0:
            tc = t
            break
    while tc > 128 and C % (tc // 2) == 0 and tc * HW * itemsize > block_budget:
        tc //= 2

    n_ctiles = C // tc
    per_image = tc * HW * itemsize
    # Fold batch images per step until the DMA is ~2 MiB (amortizes the
    # ~0.35 us per-step overhead), but never drop below 2 grid steps: the
    # "parallel" grid axes are how v7x's two TensorCores are fed.
    target = 2 * 1024 * 1024
    bt = 1
    while (bt * 2 <= B
           and B % (bt * 2) == 0
           and bt * per_image < target
           and bt * 2 * per_image <= block_budget
           and (B // (bt * 2)) * n_ctiles >= 2):
        bt *= 2
    return bt, tc


def _spp_kernel(x_ref, o_ref, *, H, W, out_side, bt):
    """x_ref: (bt, tc, H*W) block (channels on sublanes, spatial on lanes).
       o_ref: (bt, total_cells, tc); per level, cells in row-major (i*n + j)
       order with channels riding the 128-wide lane axis."""
    for b in range(bt):
        # Channels -> lanes once per image; the XLU transpose hides under the
        # (much longer) HBM input DMA of the neighboring grid steps.
        xt = x_ref[b].T                                    # (H*W, tc)

        cells = {}  # n -> {(i, j): (1, tc) max over that adaptive window}
        for n in sorted(set(out_side), reverse=True):
            # Derive from the coarsest already-computed level that n divides:
            # adaptive window boundaries nest exactly when n | m, so this is
            # exact and minimizes work. Otherwise pool directly from the input.
            finer = None
            for m in sorted(cells):
                if m > n and m % n == 0:
                    finer = m
                    break
            lvl = {}
            if finer is not None:
                r = finer // n
                for i in range(n):
                    for j in range(n):
                        acc = None
                        for a in range(r):
                            for c_ in range(r):
                                v = cells[finer][(i * r + a, j * r + c_)]
                                acc = v if acc is None else jnp.maximum(acc, v)
                        lvl[(i, j)] = acc
            else:
                for i in range(n):
                    h0, h1 = _win(i, n, H)
                    # Row-band reduction: pure-VPU maximum chain over (W, tc) slabs.
                    band = xt[h0 * W:(h0 + 1) * W, :]      # (W, tc)
                    for h in range(h0 + 1, h1):
                        band = jnp.maximum(band, xt[h * W:(h + 1) * W, :])
                    for j in range(n):
                        w0, w1 = _win(j, n, W)
                        cell = band[w0:w0 + 1, :]          # (1, tc)
                        for w in range(w0 + 1, w1):
                            cell = jnp.maximum(cell, band[w:w + 1, :])
                        lvl[(i, j)] = cell
            cells[n] = lvl

        rows = []
        for n in out_side:
            for i in range(n):
                for j in range(n):
                    rows.append(cells[n][(i, j)])
        # One lane-dense (total_cells, tc) store per image.
        o_ref[b] = jnp.concatenate(rows, axis=0)


def spatial_pyramid_pool2d(x, out_side=(1, 2, 4)):
    """Forward pass of SpatialPyramidPool2D.

    x: (B, C, H, W) -> (B, C * sum(n*n)); ordering matches the PyTorch module's
    per-level .view(B, -1) followed by torch.cat along dim 1.
    """
    B, C, H, W = x.shape
    out_side = tuple(out_side)
    total = sum(n * n for n in out_side)
    HW = H * W
    itemsize = jnp.dtype(x.dtype).itemsize

    # Free reshape (no HBM data movement) — replaces the old NCHW->NHWC HBM
    # transpose that tripled HBM traffic for this memory-bound op.
    x3 = x.reshape(B, C, HW)

    cap = _vmem_capacity_bytes()
    block_budget = max(cap // 6, 2 * 1024 * 1024)
    bt, tc = _choose_tiling(B, C, HW, itemsize, block_budget)
    block_bytes = bt * tc * HW * itemsize
    # Working set ≈ 2x input block (double-buffered) + loaded + transposed
    # values; leave headroom below the physical per-core capacity.
    vmem_limit = int(min(max(6 * block_bytes, 32 * 1024 * 1024), cap * 7 // 8))

    kernel = functools.partial(_spp_kernel, H=H, W=W, out_side=out_side, bt=bt)

    cost = pl.CostEstimate(
        flops=B * C * HW,                                   # ~1 compare / element
        transcendentals=0,
        bytes_accessed=B * C * (HW + total) * itemsize)

    y = pl.pallas_call(
        kernel,
        out_shape=jax.ShapeDtypeStruct((B, total, C), x.dtype),
        grid=(B // bt, C // tc),
        in_specs=[pl.BlockSpec((bt, tc, HW), lambda b, c: (b, c, 0))],
        out_specs=pl.BlockSpec((bt, total, tc), lambda b, c: (b, 0, c)),
        compiler_params=pltpu.CompilerParams(
            dimension_semantics=("parallel", "parallel"),
            vmem_limit_bytes=vmem_limit),
        cost_estimate=cost,
    )(x3)  # (B, total_cells, C)

    # Tiny reorder (~total/HW of the input bytes) to torch's channel-major
    # per-level flattening, then concatenate levels.
    parts = []
    off = 0
    for n in out_side:
        lvl = y[:, off:off + n * n, :]                      # (B, n*n, C)
        parts.append(jnp.transpose(lvl, (0, 2, 1)).reshape(B, C * n * n))
        off += n * n
    return jnp.concatenate(parts, axis=1)


def _reference_spp(x, out_side=(1, 2, 4)):
    """Pure-JAX reference with PyTorch AdaptiveMaxPool2d semantics."""
    B, C, H, W = x.shape
    parts = []
    for n in out_side:
        cells = []
        for i in range(n):
            h0, h1 = _win(i, n, H)
            for j in range(n):
                w0, w1 = _win(j, n, W)
                cells.append(jnp.max(x[:, :, h0:h1, w0:w1], axis=(2, 3))[..., None])
        y = jnp.concatenate(cells, axis=2)  # (B, C, n*n)
        parts.append(y.reshape(B, -1))
    return jnp.concatenate(parts, axis=1)


if __name__ == "__main__":
    key = jax.random.PRNGKey(0)
    B, C, H, W = 2, 4, 16, 16
    out_side = (1, 2, 4)
    x = jax.random.normal(key, (B, C, H, W), dtype=jnp.float32)

    out = spatial_pyramid_pool2d(x, out_side)
    out = jax.block_until_ready(out)

    ref = _reference_spp(x, out_side)
    assert out.shape == (B, C * sum(n * n for n in out_side)), out.shape
    assert jnp.allclose(out, ref, atol=1e-6, rtol=1e-6), "mismatch vs reference"

    print("KERNEL_OK")
</pallas_src>

<mosaic_0001>
module attributes {stable_mosaic.version = 11 : i64} {
  func.func @_spp_kernel(%arg0: i32, %arg1: i32, %arg2: memref<1x4x256xf32, #tpu.memory_space<vmem>>, %arg3: memref<1x21x4xf32, #tpu.memory_space<vmem>>) attributes {dimension_semantics = [#tpu.dimension_semantics<parallel>, #tpu.dimension_semantics<parallel>], iteration_bounds = array<i64: 2, 1>, scalar_prefetch = 0 : i64, scratch_operands = 0 : i64, tpu.core_type = #tpu.core_type<tc>, window_params = [{transform_indices = @transform_0, window_bounds = array<i64: 1, 4, 256>}, {transform_indices = @transform_1, window_bounds = array<i64: 1, 21, 4>}]} {
    %c0 = arith.constant 0 : index
    %c0_0 = arith.constant 0 : index
    %c0_1 = arith.constant 0 : index
    %0 = vector.load %arg2[%c0, %c0_0, %c0_1] : memref<1x4x256xf32, #tpu.memory_space<vmem>>, vector<1x4x256xf32>
    %1 = vector.shape_cast %0 : vector<1x4x256xf32> to vector<4x256xf32>
    %2 = tpu.transpose %1, [1, 0] : vector<4x256xf32> -> vector<256x4xf32>
    %3 = vector.extract_strided_slice %2 {offsets = [0, 0], sizes = [16, 4], strides = [1, 1]} : vector<256x4xf32> to vector<16x4xf32>
    %4 = vector.extract_strided_slice %2 {offsets = [16, 0], sizes = [16, 4], strides = [1, 1]} : vector<256x4xf32> to vector<16x4xf32>
    %5 = arith.maximumf %3, %4 : vector<16x4xf32>
    %6 = vector.extract_strided_slice %2 {offsets = [32, 0], sizes = [16, 4], strides = [1, 1]} : vector<256x4xf32> to vector<16x4xf32>
    %7 = arith.maximumf %5, %6 : vector<16x4xf32>
    %8 = vector.extract_strided_slice %2 {offsets = [48, 0], sizes = [16, 4], strides = [1, 1]} : vector<256x4xf32> to vector<16x4xf32>
    %9 = arith.maximumf %7, %8 : vector<16x4xf32>
    %10 = vector.extract_strided_slice %9 {offsets = [0, 0], sizes = [1, 4], strides = [1, 1]} : vector<16x4xf32> to vector<1x4xf32>
    %11 = vector.extract_strided_slice %9 {offsets = [1, 0], sizes = [1, 4], strides = [1, 1]} : vector<16x4xf32> to vector<1x4xf32>
    %12 = arith.maximumf %10, %11 : vector<1x4xf32>
    %13 = vector.extract_strided_slice %9 {offsets = [2, 0], sizes = [1, 4], strides = [1, 1]} : vector<16x4xf32> to vector<1x4xf32>
    %14 = arith.maximumf %12, %13 : vector<1x4xf32>
    %15 = vector.extract_strided_slice %9 {offsets = [3, 0], sizes = [1, 4], strides = [1, 1]} : vector<16x4xf32> to vector<1x4xf32>
    %16 = arith.maximumf %14, %15 : vector<1x4xf32>
    %17 = vector.extract_strided_slice %9 {offsets = [4, 0], sizes = [1, 4], strides = [1, 1]} : vector<16x4xf32> to vector<1x4xf32>
    %18 = vector.extract_strided_slice %9 {offsets = [5, 0], sizes = [1, 4], strides = [1, 1]} : vector<16x4xf32> to vector<1x4xf32>
    %19 = arith.maximumf %17, %18 : vector<1x4xf32>
    %20 = vector.extract_strided_slice %9 {offsets = [6, 0], sizes = [1, 4], strides = [1, 1]} : vector<16x4xf32> to vector<1x4xf32>
    %21 = arith.maximumf %19, %20 : vector<1x4xf32>
    %22 = vector.extract_strided_slice %9 {offsets = [7, 0], sizes = [1, 4], strides = [1, 1]} : vector<16x4xf32> to vector<1x4xf32>
    %23 = arith.maximumf %21, %22 : vector<1x4xf32>
    %24 = vector.extract_strided_slice %9 {offsets = [8, 0], sizes = [1, 4], strides = [1, 1]} : vector<16x4xf32> to vector<1x4xf32>
    %25 = vector.extract_strided_slice %9 {offsets = [9, 0], sizes = [1, 4], strides = [1, 1]} : vector<16x4xf32> to vector<1x4xf32>
    %26 = arith.maximumf %24, %25 : vector<1x4xf32>
    %27 = vector.extract_strided_slice %9 {offsets = [10, 0], sizes = [1, 4], strides = [1, 1]} : vector<16x4xf32> to vector<1x4xf32>
    %28 = arith.maximumf %26, %27 : vector<1x4xf32>
    %29 = vector.extract_strided_slice %9 {offsets = [11, 0], sizes = [1, 4], strides = [1, 1]} : vector<16x4xf32> to vector<1x4xf32>
    %30 = arith.maximumf %28, %29 : vector<1x4xf32>
    %31 = vector.extract_strided_slice %9 {offsets = [12, 0], sizes = [1, 4], strides = [1, 1]} : vector<16x4xf32> to vector<1x4xf32>
    %32 = vector.extract_strided_slice %9 {offsets = [13, 0], sizes = [1, 4], strides = [1, 1]} : vector<16x4xf32> to vector<1x4xf32>
    %33 = arith.maximumf %31, %32 : vector<1x4xf32>
    %34 = vector.extract_strided_slice %9 {offsets = [14, 0], sizes = [1, 4], strides = [1, 1]} : vector<16x4xf32> to vector<1x4xf32>
    %35 = arith.maximumf %33, %34 : vector<1x4xf32>
    %36 = vector.extract_strided_slice %9 {offsets = [15, 0], sizes = [1, 4], strides = [1, 1]} : vector<16x4xf32> to vector<1x4xf32>
    %37 = arith.maximumf %35, %36 : vector<1x4xf32>
    %38 = vector.extract_strided_slice %2 {offsets = [64, 0], sizes = [16, 4], strides = [1, 1]} : vector<256x4xf32> to vector<16x4xf32>
    %39 = vector.extract_strided_slice %2 {offsets = [80, 0], sizes = [16, 4], strides = [1, 1]} : vector<256x4xf32> to vector<16x4xf32>
    %40 = arith.maximumf %38, %39 : vector<16x4xf32>
    %41 = vector.extract_strided_slice %2 {offsets = [96, 0], sizes = [16, 4], strides = [1, 1]} : vector<256x4xf32> to vector<16x4xf32>
    %42 = arith.maximumf %40, %41 : vector<16x4xf32>
    %43 = vector.extract_strided_slice %2 {offsets = [112, 0], sizes = [16, 4], strides = [1, 1]} : vector<256x4xf32> to vector<16x4xf32>
    %44 = arith.maximumf %42, %43 : vector<16x4xf32>
    %45 = vector.extract_strided_slice %44 {offsets = [0, 0], sizes = [1, 4], strides = [1, 1]} : vector<16x4xf32> to vector<1x4xf32>
    %46 = vector.extract_strided_slice %44 {offsets = [1, 0], sizes = [1, 4], strides = [1, 1]} : vector<16x4xf32> to vector<1x4xf32>
    %47 = arith.maximumf %45, %46 : vector<1x4xf32>
    %48 = vector.extract_strided_slice %44 {offsets = [2, 0], sizes = [1, 4], strides = [1, 1]} : vector<16x4xf32> to vector<1x4xf32>
    %49 = arith.maximumf %47, %48 : vector<1x4xf32>
    %50 = vector.extract_strided_slice %44 {offsets = [3, 0], sizes = [1, 4], strides = [1, 1]} : vector<16x4xf32> to vector<1x4xf32>
    %51 = arith.maximumf %49, %50 : vector<1x4xf32>
    %52 = vector.extract_strided_slice %44 {offsets = [4, 0], sizes = [1, 4], strides = [1, 1]} : vector<16x4xf32> to vector<1x4xf32>
    %53 = vector.extract_strided_slice %44 {offsets = [5, 0], sizes = [1, 4], strides = [1, 1]} : vector<16x4xf32> to vector<1x4xf32>
    %54 = arith.maximumf %52, %53 : vector<1x4xf32>
    %55 = vector.extract_strided_slice %44 {offsets = [6, 0], sizes = [1, 4], strides = [1, 1]} : vector<16x4xf32> to vector<1x4xf32>
    %56 = arith.maximumf %54, %55 : vector<1x4xf32>
    %57 = vector.extract_strided_slice %44 {offsets = [7, 0], sizes = [1, 4], strides = [1, 1]} : vector<16x4xf32> to vector<1x4xf32>
    %58 = arith.maximumf %56, %57 : vector<1x4xf32>
    %59 = vector.extract_strided_slice %44 {offsets = [8, 0], sizes = [1, 4], strides = [1, 1]} : vector<16x4xf32> to vector<1x4xf32>
    %60 = vector.extract_strided_slice %44 {offsets = [9, 0], sizes = [1, 4], strides = [1, 1]} : vector<16x4xf32> to vector<1x4xf32>
    %61 = arith.maximumf %59, %60 : vector<1x4xf32>
    %62 = vector.extract_strided_slice %44 {offsets = [10, 0], sizes = [1, 4], strides = [1, 1]} : vector<16x4xf32> to vector<1x4xf32>
    %63 = arith.maximumf %61, %62 : vector<1x4xf32>
    %64 = vector.extract_strided_slice %44 {offsets = [11, 0], sizes = [1, 4], strides = [1, 1]} : vector<16x4xf32> to vector<1x4xf32>
    %65 = arith.maximumf %63, %64 : vector<1x4xf32>
    %66 = vector.extract_strided_slice %44 {offsets = [12, 0], sizes = [1, 4], strides = [1, 1]} : vector<16x4xf32> to vector<1x4xf32>
    %67 = vector.extract_strided_slice %44 {offsets = [13, 0], sizes = [1, 4], strides = [1, 1]} : vector<16x4xf32> to vector<1x4xf32>
    %68 = arith.maximumf %66, %67 : vector<1x4xf32>
    %69 = vector.extract_strided_slice %44 {offsets = [14, 0], sizes = [1, 4], strides = [1, 1]} : vector<16x4xf32> to vector<1x4xf32>
    %70 = arith.maximumf %68, %69 : vector<1x4xf32>
    %71 = vector.extract_strided_slice %44 {offsets = [15, 0], sizes = [1, 4], strides = [1, 1]} : vector<16x4xf32> to vector<1x4xf32>
    %72 = arith.maximumf %70, %71 : vector<1x4xf32>
    %73 = vector.extract_strided_slice %2 {offsets = [128, 0], sizes = [16, 4], strides = [1, 1]} : vector<256x4xf32> to vector<16x4xf32>
    %74 = vector.extract_strided_slice %2 {offsets = [144, 0], sizes = [16, 4], strides = [1, 1]} : vector<256x4xf32> to vector<16x4xf32>
    %75 = arith.maximumf %73, %74 : vector<16x4xf32>
    %76 = vector.extract_strided_slice %2 {offsets = [160, 0], sizes = [16, 4], strides = [1, 1]} : vector<256x4xf32> to vector<16x4xf32>
    %77 = arith.maximumf %75, %76 : vector<16x4xf32>
    %78 = vector.extract_strided_slice %2 {offsets = [176, 0], sizes = [16, 4], strides = [1, 1]} : vector<256x4xf32> to vector<16x4xf32>
    %79 = arith.maximumf %77, %78 : vector<16x4xf32>
    %80 = vector.extract_strided_slice %79 {offsets = [0, 0], sizes = [1, 4], strides = [1, 1]} : vector<16x4xf32> to vector<1x4xf32>
    %81 = vector.extract_strided_slice %79 {offsets = [1, 0], sizes = [1, 4], strides = [1, 1]} : vector<16x4xf32> to vector<1x4xf32>
    %82 = arith.maximumf %80, %81 : vector<1x4xf32>
    %83 = vector.extract_strided_slice %79 {offsets = [2, 0], sizes = [1, 4], strides = [1, 1]} : vector<16x4xf32> to vector<1x4xf32>
    %84 = arith.maximumf %82, %83 : vector<1x4xf32>
    %85 = vector.extract_strided_slice %79 {offsets = [3, 0], sizes = [1, 4], strides = [1, 1]} : vector<16x4xf32> to vector<1x4xf32>
    %86 = arith.maximumf %84, %85 : vector<1x4xf32>
    %87 = vector.extract_strided_slice %79 {offsets = [4, 0], sizes = [1, 4], strides = [1, 1]} : vector<16x4xf32> to vector<1x4xf32>
    %88 = vector.extract_strided_slice %79 {offsets = [5, 0], sizes = [1, 4], strides = [1, 1]} : vector<16x4xf32> to vector<1x4xf32>
    %89 = arith.maximumf %87, %88 : vector<1x4xf32>
    %90 = vector.extract_strided_slice %79 {offsets = [6, 0], sizes = [1, 4], strides = [1, 1]} : vector<16x4xf32> to vector<1x4xf32>
    %91 = arith.maximumf %89, %90 : vector<1x4xf32>
    %92 = vector.extract_strided_slice %79 {offsets = [7, 0], sizes = [1, 4], strides = [1, 1]} : vector<16x4xf32> to vector<1x4xf32>
    %93 = arith.maximumf %91, %92 : vector<1x4xf32>
    %94 = vector.extract_strided_slice %79 {offsets = [8, 0], sizes = [1, 4], strides = [1, 1]} : vector<16x4xf32> to vector<1x4xf32>
    %95 = vector.extract_strided_slice %79 {offsets = [9, 0], sizes = [1, 4], strides = [1, 1]} : vector<16x4xf32> to vector<1x4xf32>
    %96 = arith.maximumf %94, %95 : vector<1x4xf32>
    %97 = vector.extract_strided_slice %79 {offsets = [10, 0], sizes = [1, 4], strides = [1, 1]} : vector<16x4xf32> to vector<1x4xf32>
    %98 = arith.maximumf %96, %97 : vector<1x4xf32>
    %99 = vector.extract_strided_slice %79 {offsets = [11, 0], sizes = [1, 4], strides = [1, 1]} : vector<16x4xf32> to vector<1x4xf32>
    %100 = arith.maximumf %98, %99 : vector<1x4xf32>
    %101 = vector.extract_strided_slice %79 {offsets = [12, 0], sizes = [1, 4], strides = [1, 1]} : vector<16x4xf32> to vector<1x4xf32>
    %102 = vector.extract_strided_slice %79 {offsets = [13, 0], sizes = [1, 4], strides = [1, 1]} : vector<16x4xf32> to vector<1x4xf32>
    %103 = arith.maximumf %101, %102 : vector<1x4xf32>
    %104 = vector.extract_strided_slice %79 {offsets = [14, 0], sizes = [1, 4], strides = [1, 1]} : vector<16x4xf32> to vector<1x4xf32>
    %105 = arith.maximumf %103, %104 : vector<1x4xf32>
    %106 = vector.extract_strided_slice %79 {offsets = [15, 0], sizes = [1, 4], strides = [1, 1]} : vector<16x4xf32> to vector<1x4xf32>
    %107 = arith.maximumf %105, %106 : vector<1x4xf32>
    %108 = vector.extract_strided_slice %2 {offsets = [192, 0], sizes = [16, 4], strides = [1, 1]} : vector<256x4xf32> to vector<16x4xf32>
    %109 = vector.extract_strided_slice %2 {offsets = [208, 0], sizes = [16, 4], strides = [1, 1]} : vector<256x4xf32> to vector<16x4xf32>
    %110 = arith.maximumf %108, %109 : vector<16x4xf32>
    %111 = vector.extract_strided_slice %2 {offsets = [224, 0], sizes = [16, 4], strides = [1, 1]} : vector<256x4xf32> to vector<16x4xf32>
    %112 = arith.maximumf %110, %111 : vector<16x4xf32>
    %113 = vector.extract_strided_slice %2 {offsets = [240, 0], sizes = [16, 4], strides = [1, 1]} : vector<256x4xf32> to vector<16x4xf32>
    %114 = arith.maximumf %112, %113 : vector<16x4xf32>
    %115 = vector.extract_strided_slice %114 {offsets = [0, 0], sizes = [1, 4], strides = [1, 1]} : vector<16x4xf32> to vector<1x4xf32>
    %116 = vector.extract_strided_slice %114 {offsets = [1, 0], sizes = [1, 4], strides = [1, 1]} : vector<16x4xf32> to vector<1x4xf32>
    %117 = arith.maximumf %115, %116 : vector<1x4xf32>
    %118 = vector.extract_strided_slice %114 {offsets = [2, 0], sizes = [1, 4], strides = [1, 1]} : vector<16x4xf32> to vector<1x4xf32>
    %119 = arith.maximumf %117, %118 : vector<1x4xf32>
    %120 = vector.extract_strided_slice %114 {offsets = [3, 0], sizes = [1, 4], strides = [1, 1]} : vector<16x4xf32> to vector<1x4xf32>
    %121 = arith.maximumf %119, %120 : vector<1x4xf32>
    %122 = vector.extract_strided_slice %114 {offsets = [4, 0], sizes = [1, 4], strides = [1, 1]} : vector<16x4xf32> to vector<1x4xf32>
    %123 = vector.extract_strided_slice %114 {offsets = [5, 0], sizes = [1, 4], strides = [1, 1]} : vector<16x4xf32> to vector<1x4xf32>
    %124 = arith.maximumf %122, %123 : vector<1x4xf32>
    %125 = vector.extract_strided_slice %114 {offsets = [6, 0], sizes = [1, 4], strides = [1, 1]} : vector<16x4xf32> to vector<1x4xf32>
    %126 = arith.maximumf %124, %125 : vector<1x4xf32>
    %127 = vector.extract_strided_slice %114 {offsets = [7, 0], sizes = [1, 4], strides = [1, 1]} : vector<16x4xf32> to vector<1x4xf32>
    %128 = arith.maximumf %126, %127 : vector<1x4xf32>
    %129 = vector.extract_strided_slice %114 {offsets = [8, 0], sizes = [1, 4], strides = [1, 1]} : vector<16x4xf32> to vector<1x4xf32>
    %130 = vector.extract_strided_slice %114 {offsets = [9, 0], sizes = [1, 4], strides = [1, 1]} : vector<16x4xf32> to vector<1x4xf32>
    %131 = arith.maximumf %129, %130 : vector<1x4xf32>
    %132 = vector.extract_strided_slice %114 {offsets = [10, 0], sizes = [1, 4], strides = [1, 1]} : vector<16x4xf32> to vector<1x4xf32>
    %133 = arith.maximumf %131, %132 : vector<1x4xf32>
    %134 = vector.extract_strided_slice %114 {offsets = [11, 0], sizes = [1, 4], strides = [1, 1]} : vector<16x4xf32> to vector<1x4xf32>
    %135 = arith.maximumf %133, %134 : vector<1x4xf32>
    %136 = vector.extract_strided_slice %114 {offsets = [12, 0], sizes = [1, 4], strides = [1, 1]} : vector<16x4xf32> to vector<1x4xf32>
    %137 = vector.extract_strided_slice %114 {offsets = [13, 0], sizes = [1, 4], strides = [1, 1]} : vector<16x4xf32> to vector<1x4xf32>
    %138 = arith.maximumf %136, %137 : vector<1x4xf32>
    %139 = vector.extract_strided_slice %114 {offsets = [14, 0], sizes = [1, 4], strides = [1, 1]} : vector<16x4xf32> to vector<1x4xf32>
    %140 = arith.maximumf %138, %139 : vector<1x4xf32>
    %141 = vector.extract_strided_slice %114 {offsets = [15, 0], sizes = [1, 4], strides = [1, 1]} : vector<16x4xf32> to vector<1x4xf32>
    %142 = arith.maximumf %140, %141 : vector<1x4xf32>
    %143 = arith.maximumf %16, %23 : vector<1x4xf32>
    %144 = arith.maximumf %143, %51 : vector<1x4xf32>
    %145 = arith.maximumf %144, %58 : vector<1x4xf32>
    %146 = arith.maximumf %30, %37 : vector<1x4xf32>
    %147 = arith.maximumf %146, %65 : vector<1x4xf32>
    %148 = arith.maximumf %147, %72 : vector<1x4xf32>
    %149 = arith.maximumf %86, %93 : vector<1x4xf32>
    %150 = arith.maximumf %149, %121 : vector<1x4xf32>
    %151 = arith.maximumf %150, %128 : vector<1x4xf32>
    %152 = arith.maximumf %100, %107 : vector<1x4xf32>
    %153 = arith.maximumf %152, %135 : vector<1x4xf32>
    %154 = arith.maximumf %153, %142 : vector<1x4xf32>
    %155 = arith.maximumf %145, %148 : vector<1x4xf32>
    %156 = arith.maximumf %155, %151 : vector<1x4xf32>
    %157 = arith.maximumf %156, %154 : vector<1x4xf32>
    %158 = tpu.concatenate %157, %145, %148, %151, %154, %16, %23, %30, %37, %51, %58, %65, %72, %86, %93, %100 in 0 : vector<1x4xf32>, vector<1x4xf32>, vector<1x4xf32>, vector<1x4xf32>, vector<1x4xf32>, vector<1x4xf32>, vector<1x4xf32>, vector<1x4xf32>, vector<1x4xf32>, vector<1x4xf32>, vector<1x4xf32>, vector<1x4xf32>, vector<1x4xf32>, vector<1x4xf32>, vector<1x4xf32>, vector<1x4xf32> -> vector<16x4xf32>
    %159 = tpu.concatenate %107, %121, %128, %135, %142 in 0 : vector<1x4xf32>, vector<1x4xf32>, vector<1x4xf32>, vector<1x4xf32>, vector<1x4xf32> -> vector<5x4xf32>
    %160 = tpu.concatenate %158, %159 in 0 : vector<16x4xf32>, vector<5x4xf32> -> vector<21x4xf32>
    %c0_2 = arith.constant 0 : index
    %c0_3 = arith.constant 0 : index
    %c0_4 = arith.constant 0 : index
    %161 = vector.load %arg3[%c0_2, %c0_3, %c0_4] : memref<1x21x4xf32, #tpu.memory_space<vmem>>, vector<1x21x4xf32>
    %162 = vector.shape_cast %161 : vector<1x21x4xf32> to vector<21x4xf32>
    %163 = vector.shape_cast %160 : vector<21x4xf32> to vector<1x21x4xf32>
    tpu.vector_store %arg3[%c0_2, %c0_3, %c0_4], %163 {strides = array<i32>} : memref<1x21x4xf32, #tpu.memory_space<vmem>>, vector<1x21x4xf32>,
    return
  }
  func.func @transform_0(%arg0: i32, %arg1: i32) -> (i32, i32, i32) {
    %c0_i32 = arith.constant 0 : i32
    %c0_i32_0 = arith.constant 0 : i32
    return %arg0, %arg1, %c0_i32 : i32, i32, i32
  }
  func.func @transform_1(%arg0: i32, %arg1: i32) -> (i32, i32, i32) {
    %c0_i32 = arith.constant 0 : i32
    %c0_i32_0 = arith.constant 0 : i32
    return %arg0, %c0_i32, %arg1 : i32, i32, i32
  }
}

</mosaic_0001>

<bundles_post_ra>
// kernel: tpu_custom_call.1
= control target key start
LH: loop header
LB: loop body
LE: loop exit
PB: predicated region body
PF: predicated region fallthrough
CT: control target
= control target key end

     0   :  { %6 = vsyncpa [#allocation3], 0  ;;  %s830_s0 = inlined_call_operand.hbm [shape: f32[2,4,256], index: 0, kind: input, shape index: {}]   ;;  %s831_s1 = inlined_call_operand.vmem [shape: f32[2,21,4], index: 1, kind: output, shape index: {}]  }
   0x1   :  { %8 = vsyncpa [#allocation3 + $0x1], 0  ;;  %s695_s6 = smov 0   ;;  %s697_s7 = smov 0  }
   0x2   :  { %s699_s8 = smov 0   ;;  %s701_s9 = smov 0  }
   0x3   :  { %s703_s10 = smov 0   ;;  %s705_s11 = smov 0  }
   0x4 LB: > { %s533_s12 = sadd.s32 4294967295, %s683_s11   ;;  %s26_s13 = sadd.s32 1, %s679_s10  ;;  %s683_s11 = sphi %s705_s11, %s14_s11   ;;  %s679_s10 = sphi %s703_s10, %s838_s10   ;;  %s675_s9 = sphi %s701_s9, %s837_s9   ;;  %s671_s8 = sphi %s699_s8, %s836_s8   ;;  %s667_s7 = sphi %s697_s7, %s835_s7   ;;  %s663_s6 = sphi %s695_s6, %s834_s6  }
   0x5   : > { %p28_p0 = scmp.ge.s32.totalorder %s26_s13, 2  ;;  %s35_s14 = sadd.s32 1, %s671_s8 }
   0x6   : > { %p42_p1 = scmp.ne.s32.totalorder %s671_s8, %s667_s7  ;;  %p43_p2 = scmp.eq.s32.totalorder %s683_s11, 0 }
   0x7   : > { %s840_s13 = smov (%p28_p0, %s26_s13), 0  ;;  %p48_p4 = scmp.ne.s32.totalorder %s667_s7, %s663_s6 }
   0x8   : > { %p731_p3 = por %p43_p2, %p42_p1  ;;  %s30_s16 = ssub.s32 %s679_s10, %s840_s13 }
   0x9   : > { %p49_p5 = scmp.eq.s32.totalorder %s533_s12, 0  ;;  %p33_p6 = scmp.eq.s32.totalorder %s30_s16, 0 }
   0xa   : > { %p553_p8 = scmp.lt.s32.totalorder %s683_s11, 2  ;;  %s100_s19 = sand.u32 1, %s671_s8  }
   0xb   : > { %p738_p7 = por %p49_p5, %p48_p4  ;;  %s545_s20 = sshll.u32 %s679_s10, 3 }
   0xc   : > { %s744_s18 = scalar_select %p33_p6, %s671_s8, %s35_s14  }
   0xd   : > { %s537_s21 = sshll.u32 %s100_s19, 3  ;;  %s111_s24 = scalar_lea.hbm %s830_s0, %s545_s20 }
   0xe   : > { %s113_s25 = sshll.u32 %s111_s24, 4  ;;  %s104_s26 = scalar_lea.vmem [#allocation2], %s537_s21  ;;  %s114_s25 = int_to_ptr.hbm [resolvable:$true] %s113_s25 }
   0xf   : > { %s115_s27 = sshll.u32 %s104_s26, 4  ;;  %p550_p9 = pnand %p553_p8, %p731_p3  ;;  %s116_s27 = int_to_ptr.vmem [resolvable:$true] %s115_s27 }
  0x10   : > { %p540_p10 = scmp.ge.s32.totalorder %s683_s11, 1  ;;  %p120_p11 = scmp.lt.s32.totalorder %s683_s11, 3 }
  0x11   : > { %s101_s28 = scalar_lea.sflag [#allocation3], %s100_s19 }
  0x12   : > { %552 = dma.hbm_to_vmem [thread:$0]  (!%p550_p9), %s114_s25, 128, %s116_s27, %s101_s28  }
  0x13   : > { %p121_p12 = pnand %p540_p10, %p120_p11 }
  0x14   : > { %s126_s29 = sand.u32 (!%p121_p12), 1, %s667_s7  }
  0x15   : > { %124 = sbr.rel (%p121_p12) target bundleno = 473 (0x1d9), region = 24  ;;  %s541_s30 = sshll.u32 (!%p121_p12), %s126_s29, 3 }
  0x16   : > { %s127_s2 = scalar_lea.sflag (!%p121_p12), [#allocation3], %s126_s29  ;;  %s130_s3 = scalar_lea.vmem (!%p121_p12), [#allocation2], %s541_s30 }
  0x1a   : > { %658 = dma.done.wait (%p738_p7), %s127_s2, 128  }
  0x1b   : > { %660 = vsyncadd (%p738_p7), %s127_s2, 4294967168  ;;  %v161_v0 = vld [vmem:[%s130_s3] sm:$0xff]  ;;  %vm405_vm0 = vcmask 1040384   ;;  %vm407_vm1 = vcmask 1041408   ;;  %vm409_vm2 = vcmask 1042432   ;;  %vm411_vm3 = vcmask 1043456  }
  0x1c   : > { %163 = vst [vmem:[#allocation1] ss:$2 sm:$0xff] %v161_v0  ;;  %p153_p13 = scmp.lt.s32.totalorder %s675_s9, 1  ;;  %vm413_vm4 = vcmask 1044480   ;;  %vm415_vm5 = vcmask 1045504   ;;  %vm417_vm6 = vcmask 1046528  }
  0x1d   : > { %vm436_vm7 = vcmask 31744   ;;  %vm439_vm8 = vcmask 28672  }
  0x1e   : > { %s842_s9 = smov (!%p153_p13, %s675_s9), 1 }
  0x1f   : > { %s546_s4 = smul.u32 24, %s842_s9 }
  0x21   : > { %s784_s12 = scalar_lea.vmem %s831_s1, %s546_s4 }
  0x23   : > { %v164_v1 = vld.sshfl [vmem:[#allocation1] sm:$0xff pattern:$0x75316420]  ;;  %v165_v2 = vld.sshfl [vmem:[#allocation1 + $0x8] sm:$0xff pattern:$0x75316420] }
  0x24   : > { %168 = vxpose.xlu0.b32.start.end [1/1] (short) %v164_v1, 128 }
  0xa4   : > { %200 = vxpose.xlu0.b32.start.end [1/1] (short) %v165_v2, 128 }
  0xc8   : > { %v184_v3 = vpop.trf.xlu0 }
  0xd0   : > { %v185_v4 = vpop.trf.xlu0 }
  0xd8   : > { %v186_v5 = vpop.trf.xlu0 }
  0xd9   : > { %v232_v6 = vmax.f32 %v184_v3, %v186_v5 }
  0xe0   : > { %v187_v7 = vpop.trf.xlu0 }
  0xe1   : > { %v233_v8 = vmax.f32 %v185_v4, %v187_v7 }
  0xe8   : > { %v188_v9 = vpop.trf.xlu0 }
  0xe9   : > { %v234_v10 = vmax.f32 %v232_v6, %v188_v9 }
  0xf0   : > { %v189_v11 = vpop.trf.xlu0 }
  0xf1   : > { %v235_v12 = vmax.f32 %v233_v8, %v189_v11 }
  0xf8   : > { %v190_v13 = vpop.trf.xlu0 }
  0xf9   : > { %v236_v14 = vmax.f32 %v234_v10, %v190_v13 }
  0xfb   : > { %v239_v33 = vrot.slane %v236_v14, 1  ;;  %v242_v37 = vrot.slane %v236_v14, 2  ;;  %v245_v39 = vrot.slane %v236_v14, 3 }
  0xfd   : > { %v241_v35 = vmax.f32 %v236_v14, %v239_v33 }
  0xff   : > { %v244_v38 = vmax.f32 %v241_v35, %v242_v37 }
 0x100   : > { %v191_v15 = vpop.trf.xlu0 }
 0x101   : > { %v237_v16 = vmax.f32 %v235_v12, %v191_v15  ;;  %v764_v41 = vmax.f32 %v244_v38, %v245_v39 }
 0x103   : > { %v249_v17 = vrot.slane %v237_v16, 1  ;;  %v252_v19 = vrot.slane %v237_v16, 2  ;;  %v255_v21 = vrot.slane %v237_v16, 3  ;;  %v337_v44 = vrot.slane %v764_v41, 4 }
 0x105   : > { %v251_v18 = vmax.f32 %v237_v16, %v249_v17  ;;  %v339_v50 = vmax.f32 %v764_v41, %v337_v44 }
 0x107   : > { %v254_v20 = vmax.f32 %v251_v18, %v252_v19 }
 0x108   : > { %v192_v22 = vpop.trf.xlu0 }
 0x109   : > { %v760_v23 = vmax.f32 %v254_v20, %v255_v21 }
 0x10b   : > { %v346_v24 = vrot.slane %v760_v23, 4 }
 0x10d   : > { %v348_v25 = vmax.f32 %v760_v23, %v346_v24 }
 0x110   : > { %v193_v26 = vpop.trf.xlu0 }
 0x118   : > { %v194_v27 = vpop.trf.xlu0 }
 0x119   : > { %v258_v28 = vmax.f32 %v192_v22, %v194_v27 }
 0x120   : > { %v195_v29 = vpop.trf.xlu0 }
 0x121   : > { %v259_v30 = vmax.f32 %v193_v26, %v195_v29 }
 0x128   : > { %v196_v31 = vpop.trf.xlu0 }
 0x129   : > { %v260_v32 = vmax.f32 %v258_v28, %v196_v31 }
 0x130   : > { %v197_v34 = vpop.trf.xlu0 }
 0x131   : > { %v261_v36 = vmax.f32 %v259_v30, %v197_v34 }
 0x138   : > { %v198_v40 = vpop.trf.xlu0 }
 0x139   : > { %v262_v42 = vmax.f32 %v260_v32, %v198_v40 }
 0x13b   : > { %v265_v43 = vrot.slane %v262_v42, 1  ;;  %v268_v46 = vrot.slane %v262_v42, 2  ;;  %v271_v48 = vrot.slane %v262_v42, 3 }
 0x13d   : > { %v267_v45 = vmax.f32 %v262_v42, %v265_v43 }
 0x13f   : > { %v270_v47 = vmax.f32 %v267_v45, %v268_v46 }
 0x140   : > { %v199_v49 = vpop.trf.xlu0 }
 0x141   : > { %v273_v51 = vmax.f32 %v270_v47, %v271_v48  ;;  %v263_v52 = vmax.f32 %v261_v36, %v199_v49 }
 0x143   : > { %v340_v53 = vmax.f32 %v339_v50, %v273_v51  ;;  %v342_v54 = vrot.slane %v273_v51, 4  ;;  %v393_v55 = vrot.slane %v273_v51, 7  ;;  %v395_v56 = vrot.slane %v273_v51, 2 }
 0x144   : > { %v275_v57 = vrot.slane %v263_v52, 1  ;;  %v278_v62 = vrot.slane %v263_v52, 2  ;;  %v281_v0 = vrot.slane %v263_v52, 3 }
 0x145   : > { %v768_v58 = vmax.f32 %v340_v53, %v342_v54  ;;  %v419_v59 = vsel %vm405_vm0, %v346_v24, %v393_v55 }
 0x146   : > { %v420_v60 = vsel %vm407_vm1, %v419_v59, %v395_v56  ;;  %v277_v61 = vmax.f32 %v263_v52, %v275_v57 }
 0x148   : > { %v280_v63 = vmax.f32 %v277_v61, %v278_v62  ;;  %v216_v1 = vpop.trf.xlu0 }
 0x14a   : > { %v283_v2 = vmax.f32 %v280_v63, %v281_v0 }
 0x14c   : > { %v349_v3 = vmax.f32 %v348_v25, %v283_v2  ;;  %v351_v4 = vrot.slane %v283_v2, 4  ;;  %v397_v5 = vrot.slane %v283_v2, 5 }
 0x14e   : > { %v772_v6 = vmax.f32 %v349_v3, %v351_v4  ;;  %v421_v7 = vsel %vm409_vm2, %v420_v60, %v397_v5 }
 0x14f   : > { %v422_v8 = vsel %vm411_vm3, %v421_v7, %v283_v2 }
 0x150   : > { %v372_v9 = vmax.f32 %v768_v58, %v772_v6  ;;  %v217_v10 = vpop.trf.xlu0 }
 0x158   : > { %v218_v11 = vpop.trf.xlu0 }
 0x159   : > { %v284_v15 = vmax.f32 %v216_v1, %v218_v11 }
 0x160   : > { %v219_v12 = vpop.trf.xlu0 }
 0x161   : > { %v285_v20 = vmax.f32 %v217_v10, %v219_v12 }
 0x168   : > { %v220_v13 = vpop.trf.xlu0 }
 0x169   : > { %v286_v16 = vmax.f32 %v284_v15, %v220_v13 }
 0x170   : > { %v221_v14 = vpop.trf.xlu0 }
 0x171   : > { %v287_v24 = vmax.f32 %v285_v20, %v221_v14 }
 0x178   : > { %v222_v17 = vpop.trf.xlu0 }
 0x179   : > { %v288_v18 = vmax.f32 %v286_v16, %v222_v17 }
 0x17b   : > { %v291_v19 = vrot.slane %v288_v18, 1  ;;  %v294_v22 = vrot.slane %v288_v18, 2  ;;  %v297_v26 = vrot.slane %v288_v18, 3 }
 0x17d   : > { %v293_v21 = vmax.f32 %v288_v18, %v291_v19 }
 0x17f   : > { %v296_v25 = vmax.f32 %v293_v21, %v294_v22 }
 0x180   : > { %v223_v27 = vpop.trf.xlu0 }
 0x181   : > { %v299_v28 = vmax.f32 %v296_v25, %v297_v26  ;;  %v289_v29 = vmax.f32 %v287_v24, %v223_v27 }
 0x183   : > { %v301_v30 = vrot.slane %v289_v29, 1  ;;  %v399_v31 = vrot.slane %v299_v28, 3  ;;  %v304_v33 = vrot.slane %v289_v29, 2  ;;  %v307_v35 = vrot.slane %v289_v29, 3 }
 0x184   : > { %v401_v36 = vrot.slane %v299_v28, 6  ;;  %v355_v54 = vrot.slane %v299_v28, 4 }
 0x185   : > { %v303_v32 = vmax.f32 %v289_v29, %v301_v30  ;;  %v423_v38 = vsel %vm413_vm4, %v422_v8, %v399_v31 }
 0x186   : > { %v424_v42 = vsel %vm415_vm5, %v423_v38, %v401_v36  ;;  %v357_v63 = vmax.f32 %v299_v28, %v355_v54  ;;  %v379_v28 = vrot.slane %v772_v6, 6 }
 0x187   : > { %v306_v34 = vmax.f32 %v303_v32, %v304_v33  ;;  %v387_v33 = vrot.slane %v764_v41, 3 }
 0x188   : > { %v224_v37 = vpop.trf.xlu0 }
 0x189   : > { %v309_v39 = vmax.f32 %v306_v34, %v307_v35  ;;  %v389_v35 = vrot.slane %v764_v41, 6 }
 0x18b   : > { %v403_v40 = vrot.slane %v309_v39, 1  ;;  %v364_v7 = vrot.slane %v309_v39, 4 }
 0x18d   : > { %v425_v43 = vsel %vm417_vm6, %v424_v42, %v403_v40  ;;  %v366_v16 = vmax.f32 %v309_v39, %v364_v7 }
 0x18e   : > { %438 = vst.msk [vmem:[%s784_s12 + $0x8] sm:$0xff] %vm436_vm7, %v425_v43 }
 0x190   : > { %v225_v44 = vpop.trf.xlu0 }
 0x198   : > { %v226_v45 = vpop.trf.xlu0 }
 0x199   : > { %v310_v49 = vmax.f32 %v224_v37, %v226_v45 }
 0x1a0   : > { %v227_v46 = vpop.trf.xlu0 }
 0x1a1   : > { %v311_v55 = vmax.f32 %v225_v44, %v227_v46 }
 0x1a8   : > { %v228_v47 = vpop.trf.xlu0 }
 0x1a9   : > { %v312_v50 = vmax.f32 %v310_v49, %v228_v47 }
 0x1b0   : > { %v229_v48 = vpop.trf.xlu0 }
 0x1b1   : > { %v313_v59 = vmax.f32 %v311_v55, %v229_v48 }
 0x1b8   : > { %v230_v51 = vpop.trf.xlu0 }
 0x1b9   : > { %v314_v52 = vmax.f32 %v312_v50, %v230_v51 }
 0x1bb   : > { %v317_v53 = vrot.slane %v314_v52, 1  ;;  %v320_v57 = vrot.slane %v314_v52, 2  ;;  %v323_v61 = vrot.slane %v314_v52, 3 }
 0x1bd   : > { %v319_v56 = vmax.f32 %v314_v52, %v317_v53 }
 0x1bf   : > { %v322_v60 = vmax.f32 %v319_v56, %v320_v57 }
 0x1c0   : > { %v231_v62 = vpop.trf.xlu0 }
 0x1c1   : > { %v325_v0 = vmax.f32 %v322_v60, %v323_v61  ;;  %v315_v1 = vmax.f32 %v313_v59, %v231_v62 }
 0x1c3   : > { %v358_v2 = vmax.f32 %v357_v63, %v325_v0  ;;  %v360_v3 = vrot.slane %v325_v0, 4  ;;  %v327_v4 = vrot.slane %v315_v1, 1  ;;  %v426_v8 = vrot.slane %v325_v0, 7 }
 0x1c4   : > { %v330_v11 = vrot.slane %v315_v1, 2  ;;  %v333_v14 = vrot.slane %v315_v1, 3  ;;  %v428_v15 = vrot.slane %v325_v0, 2 }
 0x1c5   : > { %v362_v5 = vmax.f32 %v358_v2, %v360_v3  ;;  %v329_v10 = vmax.f32 %v315_v1, %v327_v4  ;;  %v432_v17 = vsel %vm405_vm0, %v364_v7, %v426_v8 }
 0x1c6   : > { %v433_v22 = vsel %vm407_vm1, %v432_v17, %v428_v15 }
 0x1c7   : > { %v373_v12 = vmax.f32 %v372_v9, %v362_v5  ;;  %v332_v13 = vmax.f32 %v329_v10, %v330_v11  ;;  %v376_v9 = vrot.slane %v768_v58, 7  ;;  %v382_v29 = vrot.slane %v362_v5, 5 }
 0x1c8   : > { %v391_v58 = vrot.slane %v760_v23, 1 }
 0x1c9   : > { %v335_v18 = vmax.f32 %v332_v13, %v333_v14 }
 0x1cb   : > { %v367_v19 = vmax.f32 %v366_v16, %v335_v18  ;;  %v369_v20 = vrot.slane %v335_v18, 4  ;;  %v430_v21 = vrot.slane %v335_v18, 5 }
 0x1cd   : > { %v371_v24 = vmax.f32 %v367_v19, %v369_v20  ;;  %v434_v25 = vsel %vm409_vm2, %v433_v22, %v430_v21 }
 0x1ce   : > { %v435_v26 = vsel %vm411_vm3, %v434_v25, %v335_v18 }
 0x1cf   : > { %v374_v27 = vmax.f32 %v373_v12, %v371_v24  ;;  %440 = vst.msk [vmem:[%s784_s12 + $0x10] sm:$0x1f] %vm439_vm8, %v435_v26  ;;  %v385_v31 = vrot.slane %v371_v24, 4 }
 0x1d1   : > { %v406_v30 = vsel %vm405_vm0, %v374_v27, %v376_v9 }
 0x1d2   : > { %v408_v32 = vsel %vm407_vm1, %v406_v30, %v379_v28 }
 0x1d3   : > { %v410_v34 = vsel %vm409_vm2, %v408_v32, %v382_v29 }
 0x1d4   : > { %v412_v36 = vsel %vm411_vm3, %v410_v34, %v385_v31 }
 0x1d5   : > { %v414_v37 = vsel %vm413_vm4, %v412_v36, %v387_v33 }
 0x1d6   : > { %v416_v6 = vsel %vm415_vm5, %v414_v37, %v389_v35 }
 0x1d7   : > { %v418_v38 = vsel %vm417_vm6, %v416_v6, %v391_v58 }
 0x1d8   : > { %437 = vst.msk [vmem:[%s784_s12] sm:$0xff] %vm436_vm7, %v418_v38 }
 0x1d9 PF: > { %s14_s11 = sadd.s32 1, %s683_s11   ;;  %s834_s6 = smov %s667_s7 }
 0x1da   : > { %p11_p0 = scmp.ge.s32.totalorder %s14_s11, 4   ;;  %s835_s7 = smov %s671_s8 }
 0x1db   : > { %s836_s8 = smov %s744_s18  ;;  %s837_s9 = smov %s679_s10 }
 0x1dc   : > { %s838_s10 = smov %s840_s13  ;;  %13 = sbr.rel (!%p11_p0) target bundleno = 4 (0x4), region = 64 }
 0x1e1   :  { %468 = vsyncpa [#allocation3], 1 }
 0x1e2   :  { %470 = vsyncpa [#allocation3 + $0x1], 1 }

</bundles_post_ra>
